<compile_context>
chip_gen: v7x
topology: tpu7x:2x2x1
jax: 0.10.0
libtpu: 0.0.40
codegen_flags: <defaults>
</compile_context>

<pallas_src>
import functools
import math

import jax
import jax.numpy as jnp
from jax import lax
from jax.experimental import pallas as pl
from jax.experimental.pallas import tpu as pltpu

_LANES = 128
_MIN_BLOCKS = 4            # keep the 'parallel' grid long enough for v7x's 2 TCs
_CHUNK_ROWS = 256          # inner compute tile (rows): bounded working set
_MAX_BLOCK_BYTES = 16 * 1024 * 1024


def _pick_hw_params():
    """Generation-aware (target block bytes, vmem limit) with safe defaults."""
    kind = ""
    try:
        kind = jax.devices()[0].device_kind.lower()
    except Exception:
        pass
    if "v6" in kind:
        return 12 << 20, 64 << 20      # 128 MiB VMEM: big blocks, amortize step overhead
    if "v5" in kind:
        return 4 << 20, 64 << 20       # DMA-bound; just keep blocks big and fitting
    if "v7" in kind or "7x" in kind or "tpu7" in kind:
        return 8 << 20, 48 << 20       # 64 MiB physical VMEM: leave headroom
    return 6 << 20, 48 << 20


def _mod(x, m):
    """x % m for non-negative int32 x and a static positive python int m."""
    if m & (m - 1) == 0:               # power of two -> cheap AND on the VPU
        return jnp.bitwise_and(x, m - 1)
    return lax.rem(x, jnp.int32(m))


def _pick_chunk_rows(block_rows, target, step):
    """Largest multiple of `step` that divides block_rows and is <= target."""
    cr = min(block_rows, target)
    cr = (cr // step) * step
    while cr >= step and block_rows % cr:
        cr -= step
    return cr if cr >= step else block_rows


def _block_partition(total_rows, align_rows, row_bytes, target_bytes):
    """Choose a plane-aligned block size (rows) and the grid length."""
    if total_rows <= align_rows:
        return total_rows, 1
    target_rows = max(align_rows,
                      (target_bytes // row_bytes // align_rows) * align_rows)
    # Keep >= _MIN_BLOCKS grid steps when possible (feeds both v7x TensorCores
    # and keeps the double-buffered pipeline busy).
    par_rows = (total_rows // (_MIN_BLOCKS * align_rows)) * align_rows
    if par_rows >= align_rows:
        target_rows = min(target_rows, par_rows)
    block_rows = min(target_rows, (total_rows // align_rows) * align_rows)
    block_rows = max(block_rows, align_rows)
    return block_rows, pl.cdiv(total_rows, block_rows)


def _tv_sums_xla(x):
    # TODO(synk): tile inside a single huge plane with a 1-row halo instead of
    # this plain-XLA fallback for pathological plane sizes (> _MAX_BLOCK_BYTES).
    x = x.astype(jnp.float32)
    h_tv = jnp.sum(jnp.square(x[:, :, 1:, :] - x[:, :, :-1, :]))
    w_tv = jnp.sum(jnp.square(x[:, :, :, 1:] - x[:, :, :, :-1]))
    return h_tv, w_tv


# --------------------------------------------------------------------------
# Kernel for W < 128: lane-folded flat (rows, 128) layout.
# --------------------------------------------------------------------------
def _tv_kernel_folded(x_ref, h_out_ref, w_out_ref, *, width, plane,
                      chunk_rows, n_chunks, block_rows, rows_valid,
                      need_tail_mask):
    i = pl.program_id(0)
    cr = chunk_rows
    lane = lax.broadcasted_iota(jnp.int32, (1, _LANES), 1)
    sub = lax.broadcasted_iota(jnp.int32, (cr, 1), 0)
    zeros_acc = jnp.zeros((8, _LANES), jnp.float32)

    def body(c, carry):
        acc_h, acc_w, row_above = carry
        r0 = c * cr
        if not isinstance(r0, int):
            r0 = pl.multiple_of(r0, 8)
        cur = x_ref[pl.ds(r0, cr), :]                           # (cr, 128)
        # Row above each chunk row: rows 1.. come from a sublane roll of the
        # chunk itself; row 0 is the last row of the previous chunk (carried).
        above = jnp.where(sub == 0, row_above, pltpu.roll(cur, 1, axis=0))
        # Flat previous element (W neighbour) and previous-`width` (H neighbour).
        prev_w = jnp.where(lane < 1,
                           pltpu.roll(above, 1, axis=1),
                           pltpu.roll(cur, 1, axis=1))
        prev_h = jnp.where(lane < width,
                           pltpu.roll(above, width, axis=1),
                           pltpu.roll(cur, width, axis=1))
        # Masks from the block-local flat index (blocks are plane-aligned, so
        # local % plane == global % plane and local % width == global % width).
        gloc = (r0 + sub) * _LANES + lane                       # (cr, 128)
        hmask = _mod(gloc, plane) >= width                      # not first image row
        wmask = _mod(gloc, width) != 0                          # not first image col
        if need_tail_mask:                                      # partial tail block only
            valid = (i * block_rows + r0 + sub) < rows_valid
            hmask = jnp.logical_and(hmask, valid)
            wmask = jnp.logical_and(wmask, valid)
        # Differences in the input dtype (bf16 VPU on v6e/v7x); widen to f32
        # only for the square-accumulate.  jnp.where is a select, so garbage /
        # NaN in masked regions never leaks into the sums.
        dh = jnp.where(hmask, cur - prev_h, jnp.zeros_like(cur)).astype(jnp.float32)
        dw = jnp.where(wmask, cur - prev_w, jnp.zeros_like(cur)).astype(jnp.float32)
        acc_h = acc_h + jnp.sum((dh * dh).reshape(-1, 8, _LANES), axis=0)
        acc_w = acc_w + jnp.sum((dw * dw).reshape(-1, 8, _LANES), axis=0)
        return acc_h, acc_w, cur[cr - 1:cr, :]

    init = (zeros_acc, zeros_acc, jnp.zeros((1, _LANES), x_ref.dtype))
    if n_chunks == 1:
        acc_h, acc_w, _ = body(0, init)
    else:
        acc_h, acc_w, _ = lax.fori_loop(0, n_chunks, body, init,
                                        unroll=n_chunks <= 4)
    # Lane-dense unmasked per-block partials; wrapper does one dense jnp.sum.
    h_out_ref[...] = acc_h
    w_out_ref[...] = acc_w


# --------------------------------------------------------------------------
# Kernel for W >= 128: row layout (B*C*H, W), lanes already dense.
# --------------------------------------------------------------------------
def _tv_kernel_rows(x_ref, h_out_ref, w_out_ref, *, h, width, chunk_rows,
                    n_chunks, block_rows, rows_valid, need_tail_mask):
    i = pl.program_id(0)
    cr = chunk_rows
    sub = lax.broadcasted_iota(jnp.int32, (cr, 1), 0)
    col = lax.broadcasted_iota(jnp.int32, (1, width), 1)

    def body(c, carry):
        acc_h, acc_w, row_above = carry
        r0 = c * cr
        if not isinstance(r0, int):
            r0 = pl.multiple_of(r0, 8)
        cur = x_ref[pl.ds(r0, cr), :]                           # (cr, W)
        prev_row = jnp.where(sub == 0, row_above, pltpu.roll(cur, 1, axis=0))
        prev_col = pltpu.roll(cur, 1, axis=1)
        hmask = _mod(r0 + sub, h) != 0                          # (cr, 1)
        wmask = col != 0                                        # (1, W)
        if need_tail_mask:
            valid = (i * block_rows + r0 + sub) < rows_valid
            hmask = jnp.logical_and(hmask, valid)
            wmask = jnp.logical_and(wmask, valid)
        dh = jnp.where(hmask, cur - prev_row, jnp.zeros_like(cur)).astype(jnp.float32)
        dw = jnp.where(wmask, cur - prev_col, jnp.zeros_like(cur)).astype(jnp.float32)
        acc_h = acc_h + jnp.sum(dh * dh)
        acc_w = acc_w + jnp.sum(dw * dw)
        return acc_h, acc_w, cur[cr - 1:cr, :]

    init = (jnp.float32(0.0), jnp.float32(0.0),
            jnp.zeros((1, width), x_ref.dtype))
    if n_chunks == 1:
        acc_h, acc_w, _ = body(0, init)
    else:
        acc_h, acc_w, _ = lax.fori_loop(0, n_chunks, body, init,
                                        unroll=n_chunks <= 4)
    sub8 = lax.broadcasted_iota(jnp.int32, (8, _LANES), 0)
    lane8 = lax.broadcasted_iota(jnp.int32, (8, _LANES), 1)
    first = jnp.logical_and(sub8 == 0, lane8 == 0)
    h_out_ref[...] = jnp.where(first, acc_h, 0.0)
    w_out_ref[...] = jnp.where(first, acc_w, 0.0)


# --------------------------------------------------------------------------
# Wrappers
# --------------------------------------------------------------------------
def _call_tv(kernel, x2, block_shape, block_rows, num_blocks, block_bytes,
             vmem_limit, total_elems, itemsize):
    out_shape = jax.ShapeDtypeStruct((num_blocks * 8, _LANES), jnp.float32)
    h_part, w_part = pl.pallas_call(
        kernel,
        out_shape=(out_shape, out_shape),
        grid_spec=pltpu.PrefetchScalarGridSpec(
            num_scalar_prefetch=0,
            grid=(num_blocks,),
            in_specs=[pl.BlockSpec(block_shape, lambda i: (i, 0))],
            out_specs=[pl.BlockSpec((8, _LANES), lambda i: (i, 0)),
                       pl.BlockSpec((8, _LANES), lambda i: (i, 0))],
        ),
        compiler_params=pltpu.CompilerParams(
            dimension_semantics=("parallel",),
            vmem_limit_bytes=vmem_limit,
        ),
        cost_estimate=pl.CostEstimate(
            flops=10 * total_elems,
            transcendentals=0,
            bytes_accessed=total_elems * itemsize
            + 2 * num_blocks * 8 * _LANES * 4,
        ),
    )(x2)
    return jnp.sum(h_part), jnp.sum(w_part)


def _tv_sums_folded(x, target_block_bytes, vmem_limit, pack):
    b, c, h, w = x.shape
    plane = h * w
    total = b * c * plane
    itemsize = x.dtype.itemsize

    xf = x.reshape(-1)                      # contiguity-preserving (free) reshape
    pad = (-total) % (pack * _LANES)
    if pad:
        # Zero padding past the last plane provably contributes nothing to
        # either TV term.  TODO(synk): this materializes a padded copy in HBM
        # (extra read+write of the tensor); only hit when numel % (pack*128) != 0.
        xf = jnp.pad(xf, (0, pad))
    rows = (total + pad) // _LANES
    x2 = xf.reshape(rows, _LANES)

    # Plane-aligned block granule (rows), also a multiple of the sublane pack.
    align_rows = math.lcm(math.lcm(plane, _LANES) // _LANES, pack)
    row_bytes = _LANES * itemsize           # lane-dense: padded bytes == logical
    block_rows, num_blocks = _block_partition(rows, align_rows, row_bytes,
                                              target_block_bytes)
    block_bytes = block_rows * row_bytes
    if block_bytes > _MAX_BLOCK_BYTES:
        return _tv_sums_xla(x)

    chunk_rows = _pick_chunk_rows(block_rows, _CHUNK_ROWS, pack)
    kernel = functools.partial(
        _tv_kernel_folded, width=w, plane=plane, chunk_rows=chunk_rows,
        n_chunks=block_rows // chunk_rows, block_rows=block_rows,
        rows_valid=rows, need_tail_mask=(rows % block_rows) != 0)
    return _call_tv(kernel, x2, (block_rows, _LANES), block_rows, num_blocks,
                    block_bytes, vmem_limit, total, itemsize)


def _tv_sums_rows(x, target_block_bytes, vmem_limit, pack):
    b, c, h, w = x.shape
    rows = b * c * h
    itemsize = x.dtype.itemsize
    x2 = x.reshape(rows, w)

    align_rows = math.lcm(h, pack)                      # whole planes, packed
    row_bytes = pl.cdiv(w, _LANES) * _LANES * itemsize  # lane-padded VMEM bytes
    block_rows, num_blocks = _block_partition(rows, align_rows, row_bytes,
                                              target_block_bytes)
    block_bytes = block_rows * row_bytes
    if block_bytes > _MAX_BLOCK_BYTES:
        return _tv_sums_xla(x)

    chunk_rows = _pick_chunk_rows(block_rows, _CHUNK_ROWS, pack)
    kernel = functools.partial(
        _tv_kernel_rows, h=h, width=w, chunk_rows=chunk_rows,
        n_chunks=block_rows // chunk_rows, block_rows=block_rows,
        rows_valid=rows, need_tail_mask=(rows % block_rows) != 0)
    return _call_tv(kernel, x2, (block_rows, w), block_rows, num_blocks,
                    block_bytes, vmem_limit, rows * w, itemsize)


def l_tv(x, tv_loss_weight=1.0):
    """Total-variation loss matching the PyTorch L_TV module."""
    b, c, h, w = x.shape
    count_h = (h - 1) * w
    count_w = h * (w - 1)
    # NOTE: h==1 or w==1 divides by zero, exactly like the PyTorch module.

    itemsize = x.dtype.itemsize
    pack = 8 * max(1, 4 // itemsize)        # sublane packing: 8 f32 / 16 bf16 / 32 int8
    target_block_bytes, vmem_limit = _pick_hw_params()

    if w < _LANES:
        h_tv, w_tv = _tv_sums_folded(x, target_block_bytes, vmem_limit, pack)
    else:
        h_tv, w_tv = _tv_sums_rows(x, target_block_bytes, vmem_limit, pack)
    return tv_loss_weight * 2.0 * (h_tv / count_h + w_tv / count_w)


if __name__ == "__main__":
    key = jax.random.PRNGKey(0)
    x = jax.random.normal(key, (2, 4, 16, 16), dtype=jnp.float32)

    loss = jax.block_until_ready(l_tv(x, tv_loss_weight=1.0))

    # Pure-JAX reference.
    h_x, w_x = x.shape[2], x.shape[3]
    count_h = (h_x - 1) * w_x
    count_w = h_x * (w_x - 1)
    h_tv_ref = jnp.sum((x[:, :, 1:, :] - x[:, :, :-1, :]) ** 2)
    w_tv_ref = jnp.sum((x[:, :, :, 1:] - x[:, :, :, :-1]) ** 2)
    ref = 2.0 * (h_tv_ref / count_h + w_tv_ref / count_w)

    assert jnp.allclose(loss, ref, rtol=1e-5, atol=1e-5), (loss, ref)
    print("KERNEL_OK")
</pallas_src>

<mosaic_0001>
module attributes {stable_mosaic.version = 11 : i64} {
  func.func @_tv_kernel_folded(%arg0: i32, %arg1: memref<16x128xf32, #tpu.memory_space<vmem>>, %arg2: memref<8x128xf32, #tpu.memory_space<vmem>>, %arg3: memref<8x128xf32, #tpu.memory_space<vmem>>) attributes {dimension_semantics = [#tpu.dimension_semantics<parallel>], iteration_bounds = array<i64: 1>, scalar_prefetch = 0 : i64, scratch_operands = 0 : i64, tpu.core_type = #tpu.core_type<tc>, window_params = [{transform_indices = @transform_0, window_bounds = array<i64: 16, 128>}, {transform_indices = @transform_1, window_bounds = array<i64: 8, 128>}, {transform_indices = @transform_2, window_bounds = array<i64: 8, 128>}]} {
    %0 = tpu.iota {dimensions = array<i32: 1>} : vector<1x128xi32>
    %1 = tpu.iota {dimensions = array<i32: 0>} : vector<16x1xi32>
    %cst = arith.constant 0.000000e+00 : f32
    %2 = vector.broadcast %cst : f32 to vector<8x128xf32>
    %cst_0 = arith.constant 0.000000e+00 : f32
    %3 = vector.broadcast %cst_0 : f32 to vector<1x128xf32>
    %c0 = arith.constant 0 : index
    %c0_1 = arith.constant 0 : index
    %4 = vector.load %arg1[%c0, %c0_1] : memref<16x128xf32, #tpu.memory_space<vmem>>, vector<16x128xf32>
    %c0_i32 = arith.constant 0 : i32
    %5 = vector.broadcast %c0_i32 : i32 to vector<16x1xi32>
    %6 = arith.cmpi eq, %1, %5 : vector<16x1xi32>
    %c1_i32 = arith.constant 1 : i32
    %7 = tpu.dynamic_rotate %4 by %c1_i32 dim 0 : vector<16x128xf32>, i32 -> vector<16x128xf32>
    %8 = vector.shape_cast %6 : vector<16x1xi1> to vector<16x1xi1>
    %9 = vector.broadcast %8 : vector<16x1xi1> to vector<16x128xi1>
    %10 = vector.shape_cast %3 : vector<1x128xf32> to vector<1x128xf32>
    %11 = vector.broadcast %10 : vector<1x128xf32> to vector<16x128xf32>
    %12 = arith.select %9, %11, %7 : vector<16x128xi1>, vector<16x128xf32>
    %c1_i32_2 = arith.constant 1 : i32
    %13 = vector.broadcast %c1_i32_2 : i32 to vector<1x128xi32>
    %14 = arith.cmpi slt, %0, %13 : vector<1x128xi32>
    %c1_i32_3 = arith.constant 1 : i32
    %15 = tpu.dynamic_rotate %12 by %c1_i32_3 dim 1 : vector<16x128xf32>, i32 -> vector<16x128xf32>
    %c1_i32_4 = arith.constant 1 : i32
    %16 = tpu.dynamic_rotate %4 by %c1_i32_4 dim 1 : vector<16x128xf32>, i32 -> vector<16x128xf32>
    %17 = vector.shape_cast %14 : vector<1x128xi1> to vector<1x128xi1>
    %18 = vector.broadcast %17 : vector<1x128xi1> to vector<16x128xi1>
    %19 = arith.select %18, %15, %16 : vector<16x128xi1>, vector<16x128xf32>
    %c16_i32 = arith.constant 16 : i32
    %20 = vector.broadcast %c16_i32 : i32 to vector<1x128xi32>
    %21 = arith.cmpi slt, %0, %20 : vector<1x128xi32>
    %c16_i32_5 = arith.constant 16 : i32
    %22 = tpu.dynamic_rotate %12 by %c16_i32_5 dim 1 : vector<16x128xf32>, i32 -> vector<16x128xf32>
    %c16_i32_6 = arith.constant 16 : i32
    %23 = tpu.dynamic_rotate %4 by %c16_i32_6 dim 1 : vector<16x128xf32>, i32 -> vector<16x128xf32>
    %24 = vector.shape_cast %21 : vector<1x128xi1> to vector<1x128xi1>
    %25 = vector.broadcast %24 : vector<1x128xi1> to vector<16x128xi1>
    %26 = arith.select %25, %22, %23 : vector<16x128xi1>, vector<16x128xf32>
    %c0_i32_7 = arith.constant 0 : i32
    %27 = vector.broadcast %c0_i32_7 : i32 to vector<16x1xi32>
    %28 = arith.addi %27, %1 : vector<16x1xi32>
    %c128_i32 = arith.constant 128 : i32
    %29 = vector.broadcast %c128_i32 : i32 to vector<16x1xi32>
    %30 = arith.muli %28, %29 : vector<16x1xi32>
    %31 = vector.broadcast %30 : vector<16x1xi32> to vector<16x128xi32>
    %32 = vector.broadcast %0 : vector<1x128xi32> to vector<16x128xi32>
    %33 = arith.addi %31, %32 : vector<16x128xi32>
    %c255_i32 = arith.constant 255 : i32
    %34 = vector.broadcast %c255_i32 : i32 to vector<16x128xi32>
    %35 = arith.andi %33, %34 : vector<16x128xi32>
    %c16_i32_8 = arith.constant 16 : i32
    %36 = vector.broadcast %c16_i32_8 : i32 to vector<16x128xi32>
    %37 = arith.cmpi sge, %35, %36 : vector<16x128xi32>
    %c15_i32 = arith.constant 15 : i32
    %38 = vector.broadcast %c15_i32 : i32 to vector<16x128xi32>
    %39 = arith.andi %33, %38 : vector<16x128xi32>
    %c0_i32_9 = arith.constant 0 : i32
    %40 = vector.broadcast %c0_i32_9 : i32 to vector<16x128xi32>
    %41 = arith.cmpi ne, %39, %40 : vector<16x128xi32>
    %42 = arith.subf %4, %26 : vector<16x128xf32>
    %cst_10 = arith.constant 0.000000e+00 : f32
    %43 = vector.broadcast %cst_10 : f32 to vector<16x128xf32>
    %44 = arith.select %37, %42, %43 : vector<16x128xi1>, vector<16x128xf32>
    %45 = arith.subf %4, %19 : vector<16x128xf32>
    %cst_11 = arith.constant 0.000000e+00 : f32
    %46 = vector.broadcast %cst_11 : f32 to vector<16x128xf32>
    %47 = arith.select %41, %45, %46 : vector<16x128xi1>, vector<16x128xf32>
    %48 = arith.mulf %44, %44 : vector<16x128xf32>
    %49 = vector.shape_cast %48 : vector<16x128xf32> to vector<2x8x128xf32>
    %cst_12 = arith.constant dense<0.000000e+00> : vector<8x128xf32>
    %50 = vector.multi_reduction <add>, %49, %cst_12 [0] : vector<2x8x128xf32> to vector<8x128xf32>
    %51 = arith.addf %2, %50 : vector<8x128xf32>
    %52 = arith.mulf %47, %47 : vector<16x128xf32>
    %53 = vector.shape_cast %52 : vector<16x128xf32> to vector<2x8x128xf32>
    %cst_13 = arith.constant dense<0.000000e+00> : vector<8x128xf32>
    %54 = vector.multi_reduction <add>, %53, %cst_13 [0] : vector<2x8x128xf32> to vector<8x128xf32>
    %55 = arith.addf %2, %54 : vector<8x128xf32>
    %c0_14 = arith.constant 0 : index
    %c0_15 = arith.constant 0 : index
    %56 = vector.load %arg2[%c0_14, %c0_15] : memref<8x128xf32, #tpu.memory_space<vmem>>, vector<8x128xf32>
    tpu.vector_store %arg2[%c0_14, %c0_15], %51 {strides = array<i32>} : memref<8x128xf32, #tpu.memory_space<vmem>>, vector<8x128xf32>,
    %c0_16 = arith.constant 0 : index
    %c0_17 = arith.constant 0 : index
    %57 = vector.load %arg3[%c0_16, %c0_17] : memref<8x128xf32, #tpu.memory_space<vmem>>, vector<8x128xf32>
    tpu.vector_store %arg3[%c0_16, %c0_17], %55 {strides = array<i32>} : memref<8x128xf32, #tpu.memory_space<vmem>>, vector<8x128xf32>,
    return
  }
  func.func @transform_0(%arg0: i32) -> (i32, i32) {
    %c0_i32 = arith.constant 0 : i32
    %c0_i32_0 = arith.constant 0 : i32
    return %arg0, %c0_i32 : i32, i32
  }
  func.func @transform_1(%arg0: i32) -> (i32, i32) {
    %c0_i32 = arith.constant 0 : i32
    %c0_i32_0 = arith.constant 0 : i32
    return %arg0, %c0_i32 : i32, i32
  }
  func.func @transform_2(%arg0: i32) -> (i32, i32) {
    %c0_i32 = arith.constant 0 : i32
    %c0_i32_0 = arith.constant 0 : i32
    return %arg0, %c0_i32 : i32, i32
  }
}

</mosaic_0001>

<bundles_post_ra>
// kernel: tpu_custom_call.1
= control target key start
LH: loop header
LB: loop body
LE: loop exit
PB: predicated region body
PF: predicated region fallthrough
CT: control target
= control target key end

     0   :  { %8 = vsyncpa [#allocation3], 0  ;;  %s283_s0 = inlined_call_operand.hbm [shape: f32[16,128], index: 0, kind: input, shape index: {}]   ;;  %s284_s1 = inlined_call_operand.hbm [shape: f32[8,128], index: 1, kind: output, shape index: {0}]   ;;  %s285_s2 = inlined_call_operand.hbm [shape: f32[8,128], index: 2, kind: output, shape index: {1}]  }
   0x1   :  { %9 = vsyncpa [#allocation4], 0 }
   0x2   :  { %10 = vsyncpa [#allocation7], 0  ;;  %s210_s9 = smov [#allocation2]   ;;  %s138_s13 = scalar_lea.hbm %s283_s0, 256 }
   0x3   :  { %s16_s10 = sshll.u32 %s210_s9, 4  ;;  %p139_p0 = scmp.ne.s32.totalorder %s283_s0, %s138_s13  ;;  %s17_s10 = int_to_ptr.vmem [resolvable:$true] %s16_s10 }
   0x4   :  { %p142_p1 = scmp.lt.u32.totalorder %s138_s13, %s283_s0 }
   0x6   :  { %p144_p2 = pnand %p142_p1, %p139_p0 }
   0x8   :  { %147 = shalt.err (!%p144_p2)
}
   0x9   :  { %s148_s18 = scalar_lea.vmem %s17_s10, 256  ;;  %p153_p4 = scmp.lt.s32.totalorder %s17_s10, %s17_s10 }
   0xa   :  { %p149_p3 = scmp.ne.s32.totalorder %s17_s10, %s148_s18  ;;  %p154_p5 = scmp.lt.s32.totalorder %s148_s18, %s148_s18 }
   0xc   :  { %p155_p6 = por %p154_p5, %p153_p4 }
   0xe   :  { %p156_p7 = pnand %p155_p6, %p149_p3 }
  0x10   :  { %159 = shalt.err (!%p156_p7)
}
  0x11   :  { %s211_s19 = smov 128   ;;  %s212_s20 = smov 8  }
  0x12   :  { %22 = dma.hbm_to_vmem [thread:$0]  %s283_s0, 256, %s17_s10, [#allocation3], %s211_s19, %s211_s19, %s212_s20  }
  0x13   :  { %204 = dma.done.wait [#allocation3], 256  }
  0x14   :  { %205 = vsyncadd [#allocation3], 4294967040  ;;  %v26_v0 = vlaneseq  ;;  %v244_v6 = vld [vmem:[#allocation2] sm:$0xff]  ;;  %v32_v7 = vld [vmem:[#allocation2 + $0x8] sm:$0xff]  ;;  %s213_s23 = smov 1   ;;  %s214_s0 = smov 16  }
  0x15   :  { %51 = vrot.lane.b32.xlu1 %v244_v6, %s213_s23  ;;  %v35_v9 = vrot.slane %v244_v6, 7  ;;  %v36_v10 = vrot.slane %v32_v7, 7  ;;  %s215_s24 = smov [#allocation6]  }
  0x16   :  { %v29_v1 = vshrl.u32 %v26_v0, 7  ;;  %v27_v2 = vand.u32 127, %v26_v0  ;;  %s118_s25 = sshll.u32 %s215_s24, 4  ;;  %s119_s25 = int_to_ptr.vmem [resolvable:$true] %s118_s25 }
  0x17   :  { %s160_s26 = scalar_lea.vmem %s119_s25, 128  ;;  %p165_p9 = scmp.lt.s32.totalorder %s119_s25, %s119_s25 }
  0x18   :  { %v30_v3 = vadd.s32 8, %v29_v1  ;;  %v72_v4 = vmul.u32 128, %v29_v1  ;;  %vm37_vm0 = vcmp.lt.s32.totalorder %v29_v1, 1  ;;  %vm33_vm1 = vcmp.eq.s32.totalorder %v29_v1, 0  ;;  %p161_p8 = scmp.ne.s32.totalorder %s119_s25, %s160_s26  ;;  %p166_p10 = scmp.lt.s32.totalorder %s160_s26, %s160_s26 }
  0x19   :  { %v38_v12 = vsel %vm37_vm0, %v35_v9, %v36_v10  ;;  %v39_v13 = vsel %vm37_vm0, %v36_v10, %v35_v9  ;;  %53 = vrot.lane.b32.xlu1 %v32_v7, %s213_s23  ;;  %vm46_vm2 = vcmp.lt.s32.totalorder %v27_v2, 1  ;;  %vm59_vm5 = vcmp.lt.s32.totalorder %v27_v2, 16 }
  0x1a   :  { %v73_v5 = vmul.u32 128, %v30_v3  ;;  %v74_v8 = vadd.s32 %v72_v4, %v27_v2  ;;  %49 = vrot.lane.b32.xlu0 %v38_v12, %s213_s23  ;;  %v44_v14 = vsel %vm33_vm1, 0.0, %v39_v13  ;;  %p167_p11 = por %p166_p10, %p165_p9 }
  0x1c   :  { %v75_v11 = vadd.s32 %v73_v5, %v27_v2  ;;  %v80_v19 = vand.u32 15, %v74_v8  ;;  %v76_v33 = vand.u32 255, %v74_v8  ;;  %p168_p12 = pnand %p167_p11, %p161_p8 }
  0x1d   :  { %62 = vrot.lane.b32.xlu1 %v38_v12, %s214_s0 }
  0x1e   :  { %47 = vrot.lane.b32.xlu0 %v44_v14, %s213_s23  ;;  %v81_v16 = vand.u32 15, %v75_v11  ;;  %vm82_vm4 = vcmp.ne.s32.totalorder %v80_v19, 0  ;;  %v77_v27 = vand.u32 255, %v75_v11  ;;  %vm251_vm7 = vcmp.ge.s32.totalorder %v76_v33, 16 }
  0x20   :  { %vm83_vm3 = vcmp.ne.s32.totalorder %v81_v16, 0  ;;  %vm79_vm6 = vcmp.ge.s32.totalorder %v77_v27, 16 }
  0x21   :  { %66 = vrot.lane.b32.xlu1 %v32_v7, %s214_s0 }
  0x22   :  { %60 = vrot.lane.b32.xlu0 %v44_v14, %s214_s0 }
  0x26   :  { %64 = vrot.lane.b32.xlu0 %v244_v6, %s214_s0 }
  0x87   :  { %v52_v15 = vpop.permute.xlu1 %51 }
  0x8b   :  { %v54_v18 = vpop.permute.xlu1 %53 }
  0x8c   :  { %v50_v17 = vpop.permute.xlu0 %49 }
  0x8d   :  { %v58_v20 = vsel %vm46_vm2, %v50_v17, %v54_v18 }
  0x8e   :  { %v89_v21 = vsub.f32 %v32_v7, %v58_v20 }
  0x8f   :  { %v63_v25 = vpop.permute.xlu1 %62 }
  0x90   :  { %v48_v22 = vpop.permute.xlu0 %47  ;;  %v91_v23 = vsel %vm83_vm3, %v89_v21, 0.0 }
  0x91   :  { %v57_v24 = vsel %vm46_vm2, %v48_v22, %v52_v15  ;;  %v97_v30 = vmul.f32 %v91_v23, %v91_v23 }
  0x92   :  { %v88_v26 = vsub.f32 %v244_v6, %v57_v24 }
  0x93   :  { %v67_v32 = vpop.permute.xlu1 %66 }
  0x94   :  { %v90_v28 = vsel %vm82_vm4, %v88_v26, 0.0  ;;  %v61_v29 = vpop.permute.xlu0 %60  ;;  %v71_v34 = vsel %vm59_vm5, %v63_v25, %v67_v32 }
  0x95   :  { %v96_v31 = vmul.f32 %v90_v28, %v90_v28  ;;  %v85_v35 = vsub.f32 %v32_v7, %v71_v34 }
  0x97   :  { %v98_v36 = vadd.f32 %v97_v30, %v96_v31  ;;  %v87_v38 = vsel %vm79_vm6, %v85_v35, 0.0 }
  0x98   :  { %v65_v37 = vpop.permute.xlu0 %64 }
  0x99   :  { %v70_v40 = vsel %vm59_vm5, %v61_v29, %v65_v37  ;;  %101 = vst [vmem:[#allocation6] sm:$0xff] %v98_v36 }
  0x9a   :  { %v84_v41 = vsub.f32 %v244_v6, %v70_v40 }
  0x9b   :  { %171 = shalt.err (!%p168_p12)
}
  0x9c   :  { %s172_s29 = scalar_lea.hbm %s285_s2, 128 }
  0x9d   :  { %p173_p13 = scmp.ne.s32.totalorder %s285_s2, %s172_s29  ;;  %p176_p0 = scmp.lt.u32.totalorder %s172_s29, %s285_s2 }
  0x9f   :  { %p178_p1 = pnand %p176_p0, %p173_p13 }
  0xa1   :  { %181 = shalt.err (!%p178_p1)
}
  0xa2   :  { %121 = dma.vmem_to_hbm [thread:$0]  %s119_s25, 128, %s285_s2, [#allocation7]   ;;  %v86_v42 = vsel %vm251_vm7, %v84_v41, 0.0  ;;  %v93_v43 = vmul.f32 %v87_v38, %v87_v38 }
  0xa3   :  { %s216_s8 = smov [#allocation5]   ;;  %v92_v44 = vmul.f32 %v86_v42, %v86_v42 }
  0xa4   :  { %s108_s9 = sshll.u32 %s216_s8, 4  ;;  %s109_s9 = int_to_ptr.vmem [resolvable:$true] %s108_s9 }
  0xa5   :  { %v94_v45 = vadd.f32 %v93_v43, %v92_v44  ;;  %s182_s10 = scalar_lea.vmem %s109_s9, 128  ;;  %p187_p3 = scmp.lt.s32.totalorder %s109_s9, %s109_s9 }
  0xa6   :  { %p183_p2 = scmp.ne.s32.totalorder %s109_s9, %s182_s10  ;;  %p188_p4 = scmp.lt.s32.totalorder %s182_s10, %s182_s10 }
  0xa7   :  { %100 = vst [vmem:[#allocation5] sm:$0xff] %v94_v45 }
  0xa8   :  { %p189_p5 = por %p188_p4, %p187_p3 }
  0xaa   :  { %p190_p6 = pnand %p189_p5, %p183_p2 }
  0xac   :  { %193 = shalt.err (!%p190_p6)
}
  0xad   :  { %s194_s2 = scalar_lea.hbm %s284_s1, 128 }
  0xae   :  { %p195_p7 = scmp.ne.s32.totalorder %s284_s1, %s194_s2  ;;  %p198_p8 = scmp.lt.u32.totalorder %s194_s2, %s284_s1 }
  0xb0   :  { %p200_p9 = pnand %p198_p8, %p195_p7 }
  0xb2   :  { %203 = shalt.err (!%p200_p9)
}
  0xb3   :  { %111 = dma.vmem_to_hbm [thread:$0]  %s109_s9, 128, %s284_s1, [#allocation4]  }
  0xb4   :  { %206 = dma.done.wait [#allocation4], 128  }
  0xb5   :  { %207 = vsyncadd [#allocation4], 4294967168 }
  0xb6   :  { %208 = dma.done.wait [#allocation7], 128  }
  0xb7   :  { %209 = vsyncadd [#allocation7], 4294967168 }
  0xb8   :  { %128 = vsyncpa [#allocation3], 1 }
  0xb9   :  { %129 = vsyncpa [#allocation4], 1 }
  0xba   :  { %130 = vsyncpa [#allocation7], 1 }

</bundles_post_ra>
